<compile_context>
chip_gen: v5e
topology: v5e:2x2
jax: 0.10.0
libtpu: 0.0.40
codegen_flags: <defaults>
</compile_context>

<pallas_src>
import jax
import jax.numpy as jnp
from jax.experimental import pallas as pl
from jax.experimental.pallas import tpu as pltpu


def attention_kernel(h_ref, att_feats_ref, p_att_ref,
                     w_h2att_ref, b_h2att_ref, w_alpha_ref, b_alpha_ref,
                     out_ref):
    # h2att linear on the MXU: (TB, R) @ (R, A) -> (TB, A), f32 accumulate.
    h_att = jnp.dot(h_ref[...], w_h2att_ref[...],
                    preferred_element_type=jnp.float32) + b_h2att_ref[...]

    # Upcast the (possibly bf16) stream to f32, broadcast-add over att_size,
    # tanh on the EUP: (TB, S, A).
    p_att = p_att_ref[...].astype(jnp.float32)
    e = jnp.tanh(p_att + h_att[:, None, :])

    # alpha_net (A -> 1) as VPU multiply + lane reduction; avoids an N=1 MXU
    # matmul and the (B*S, A) / (B, S) reshapes of the naive version.
    w_alpha = w_alpha_ref[...]                                  # (1, A) f32
    score = jnp.sum(e * w_alpha[None, :, :], axis=-1)           # (TB, S)
    score = score + b_alpha_ref[0, 0]

    # numerically stable softmax over att_size
    m = jnp.max(score, axis=1, keepdims=True)
    p = jnp.exp(score - m)
    weight = p / jnp.sum(p, axis=1, keepdims=True)              # (TB, S) f32

    # att_res = bmm(weight.unsqueeze(1), att_feats).squeeze(1):
    # VPU multiply + sublane reduction over S (MXU-hostile 1-row matmuls avoided).
    att = att_feats_ref[...].astype(jnp.float32)                # (TB, S, D)
    att_res = jnp.sum(weight[:, :, None] * att, axis=1)         # (TB, D)
    out_ref[...] = att_res.astype(out_ref.dtype)


def _round_up(x, m):
    return ((x + m - 1) // m) * m


def _tile_budget_and_limit(S, D, A, R, stream_bytes, acc_bytes=4):
    """Max batch-tile rows that fit the streaming budget + the scoped VMEM
    limit to request from the compiler, derived from the physical VMEM of the
    current chip (v5e/v6e: 128 MiB -> limit 96 MiB, budget ~48 MiB;
    v7x: 64 MiB -> limit 48 MiB, budget ~24 MiB)."""
    try:
        vmem_cap = int(pltpu.get_tpu_info().vmem_capacity_bytes)
    except Exception:
        vmem_cap = 64 * 1024 * 1024                    # conservative fallback
    vmem_limit = min(vmem_cap * 3 // 4, 100 * 1024 * 1024)

    # Resident (not double-buffered) weights/biases.
    resident = acc_bytes * (R * A + 3 * A + 8)

    # Per batch-row cost:
    #   2x double-buffered streams: p_att (S*A), att_feats (S*D) at stream
    #   width; h (R) and out (D) at f32.
    #   + f32 intermediates that live once per tile: e (S*A) and the
    #     weighted product (S*D).
    per_row = (2 * stream_bytes * (S * A + S * D)
               + 2 * acc_bytes * (R + D)
               + acc_bytes * (S * A + S * D))

    budget = max(vmem_limit // 2 - resident, per_row)
    tb_max = max(1, budget // per_row)
    return tb_max, vmem_limit


def _choose_tile(B, tb_max):
    """Pick (tb, b_pad). Prefer: no padding, tb a multiple of 8 dividing B,
    >= 2 grid steps (v7x megacore), and as large as the budget allows."""
    if B % 8 == 0:
        b_pad = B
    elif tb_max >= B:
        # Whole batch in one tile: block dims equal the full array dims, so no
        # 8-row sublane constraint and zero padding.
        return B, B
    else:
        b_pad = _round_up(B, 8)                        # pad only to sublane quantum

    divisors = [t for t in range(8, b_pad + 1, 8) if b_pad % t == 0]
    fit = [t for t in divisors if t <= tb_max]
    multi = [t for t in fit if b_pad // t >= 2]        # keep both TCs busy on v7x
    if multi:
        tb = max(multi)
    elif fit:
        tb = max(fit)
    else:
        tb = 8                                         # smallest legal tile
    return tb, b_pad


def attention_forward(h, att_feats, p_att_feats, w_h2att, b_h2att,
                      w_alpha, b_alpha, stream_dtype=None):
    """stream_dtype: optional narrower dtype (e.g. jnp.bfloat16) for the two
    dominant streamed tensors; all in-kernel math stays f32."""
    B, S, D = att_feats.shape
    R = h.shape[1]
    A = w_h2att.shape[1]
    out_dtype = h.dtype

    if stream_dtype is not None:
        att_feats = att_feats.astype(stream_dtype)
        p_att_feats = p_att_feats.astype(stream_dtype)
    stream_bytes = jnp.dtype(att_feats.dtype).itemsize

    tb_max, vmem_limit = _tile_budget_and_limit(S, D, A, R, stream_bytes)
    tb, b_pad = _choose_tile(B, tb_max)
    nb = b_pad // tb

    if b_pad != B:
        # Rare path (huge batch, B % 8 != 0): pad to the 8-row quantum only.
        pad = b_pad - B
        h = jnp.pad(h, ((0, pad), (0, 0)))
        att_feats = jnp.pad(att_feats, ((0, pad), (0, 0), (0, 0)))
        p_att_feats = jnp.pad(p_att_feats, ((0, pad), (0, 0), (0, 0)))

    # (A, 1) -> (1, A): keep the alpha weights lane-major for the VPU reduction.
    w_alpha_row = w_alpha.reshape(1, A).astype(jnp.float32)
    w_h2att = w_h2att.astype(jnp.float32)
    b_h2att = b_h2att.astype(jnp.float32)
    b_alpha = b_alpha.astype(jnp.float32)

    grid_spec = pltpu.PrefetchScalarGridSpec(
        num_scalar_prefetch=0,
        grid=(nb,),
        in_specs=[
            pl.BlockSpec((tb, R), lambda i: (i, 0)),          # h         (streamed)
            pl.BlockSpec((tb, S, D), lambda i: (i, 0, 0)),    # att_feats (streamed)
            pl.BlockSpec((tb, S, A), lambda i: (i, 0, 0)),    # p_att     (streamed)
            pl.BlockSpec((R, A), lambda i: (0, 0)),           # w_h2att   (resident)
            pl.BlockSpec((1, A), lambda i: (0, 0)),           # b_h2att   (resident)
            pl.BlockSpec((1, A), lambda i: (0, 0)),           # w_alpha   (resident)
            pl.BlockSpec((1, 1), lambda i: (0, 0),
                         memory_space=pltpu.MemorySpace.SMEM),  # b_alpha scalar
        ],
        out_specs=pl.BlockSpec((tb, D), lambda i: (i, 0)),
    )

    out = pl.pallas_call(
        attention_kernel,
        out_shape=jax.ShapeDtypeStruct((b_pad, D), out_dtype),
        grid_spec=grid_spec,
        compiler_params=pltpu.CompilerParams(
            dimension_semantics=("parallel",),                # 2x on v7x megacore
            vmem_limit_bytes=int(vmem_limit)),
    )(h, att_feats, p_att_feats, w_h2att, b_h2att, w_alpha_row, b_alpha)

    return out[:B]


def attention_ref(h, att_feats, p_att_feats, w_h2att, b_h2att, w_alpha, b_alpha):
    """Pure-JAX reference mirroring the PyTorch forward."""
    B, S, D = att_feats.shape
    A = w_h2att.shape[1]
    h_att = h @ w_h2att + b_h2att[0]
    e = jnp.tanh(p_att_feats + h_att[:, None, :])
    score = (e.reshape(-1, A) @ w_alpha + b_alpha[0, 0]).reshape(B, S)
    weight = jax.nn.softmax(score, axis=1)
    return jnp.einsum('bs,bsd->bd', weight, att_feats)


if __name__ == "__main__":
    # Small shapes consistent with the module.
    B = 2             # batch
    att_size = 16     # e.g. 4x4 spatial grid flattened
    feat_dim = 32     # att_feats feature dim
    rnn_hid_dim = 32
    att_hid_dim = 32

    key = jax.random.PRNGKey(0)
    k_h, k_af, k_paf, k_w1, k_b1, k_w2, k_b2 = jax.random.split(key, 7)

    # Inputs
    h = jax.random.normal(k_h, (B, rnn_hid_dim), dtype=jnp.float32)
    att_feats = jax.random.normal(k_af, (B, att_size, feat_dim), dtype=jnp.float32)
    p_att_feats = jax.random.normal(k_paf, (B, att_size, att_hid_dim), dtype=jnp.float32)

    # Parameters (shapes from nn.Linear in __init__), weights pre-transposed.
    w_h2att = 0.05 * jax.random.normal(k_w1, (rnn_hid_dim, att_hid_dim), dtype=jnp.float32)
    b_h2att = 0.01 * jax.random.normal(k_b1, (1, att_hid_dim), dtype=jnp.float32)
    w_alpha = 0.05 * jax.random.normal(k_w2, (att_hid_dim, 1), dtype=jnp.float32)
    b_alpha = 0.01 * jax.random.normal(k_b2, (1, 1), dtype=jnp.float32)

    ref = attention_ref(h, att_feats, p_att_feats,
                        w_h2att, b_h2att, w_alpha, b_alpha)

    # 1) full-precision streams: tight check
    out = attention_forward(h, att_feats, p_att_feats,
                            w_h2att, b_h2att, w_alpha, b_alpha)
    out = jax.block_until_ready(out)
    assert out.shape == (B, feat_dim)
    assert jnp.allclose(out, ref, atol=1e-5, rtol=1e-5), (
        f"f32 max abs err = {jnp.max(jnp.abs(out - ref))}")

    # 2) bf16-streamed large tensors (the bandwidth-bound production path):
    #    looser check, math still accumulates in f32 inside the kernel.
    out_bf16 = attention_forward(h, att_feats, p_att_feats,
                                 w_h2att, b_h2att, w_alpha, b_alpha,
                                 stream_dtype=jnp.bfloat16)
    out_bf16 = jax.block_until_ready(out_bf16)
    assert jnp.allclose(out_bf16, ref, atol=5e-2, rtol=5e-2), (
        f"bf16 max abs err = {jnp.max(jnp.abs(out_bf16 - ref))}")

    print("KERNEL_OK")
</pallas_src>

<mosaic_0001>
module attributes {stable_mosaic.version = 11 : i64} {
  func.func @attention_kernel(%arg0: i32, %arg1: memref<2x32xf32, #tpu.memory_space<vmem>>, %arg2: memref<2x16x32xf32, #tpu.memory_space<vmem>>, %arg3: memref<2x16x32xf32, #tpu.memory_space<vmem>>, %arg4: memref<32x32xf32, #tpu.memory_space<vmem>>, %arg5: memref<1x32xf32, #tpu.memory_space<vmem>>, %arg6: memref<1x32xf32, #tpu.memory_space<vmem>>, %arg7: memref<1x1xf32, #tpu.memory_space<smem>>, %arg8: memref<2x32xf32, #tpu.memory_space<vmem>>) attributes {dimension_semantics = [#tpu.dimension_semantics<parallel>], iteration_bounds = array<i64: 1>, scalar_prefetch = 0 : i64, scratch_operands = 0 : i64, tpu.core_type = #tpu.core_type<tc>, window_params = [{transform_indices = @transform_0, window_bounds = array<i64: 2, 32>}, {transform_indices = @transform_1, window_bounds = array<i64: 2, 16, 32>}, {transform_indices = @transform_2, window_bounds = array<i64: 2, 16, 32>}, {pipeline_mode = #tpu.pipeline_mode<synchronous>, transform_indices = @transform_3, window_bounds = array<i64: 32, 32>}, {pipeline_mode = #tpu.pipeline_mode<synchronous>, transform_indices = @transform_4, window_bounds = array<i64: 1, 32>}, {pipeline_mode = #tpu.pipeline_mode<synchronous>, transform_indices = @transform_5, window_bounds = array<i64: 1, 32>}, {transform_indices = @transform_6, window_bounds = array<i64: 1, 1>}, {transform_indices = @transform_7, window_bounds = array<i64: 2, 32>}]} {
    %c0 = arith.constant 0 : index
    %c0_0 = arith.constant 0 : index
    %0 = vector.load %arg1[%c0, %c0_0] : memref<2x32xf32, #tpu.memory_space<vmem>>, vector<2x32xf32>
    %c0_1 = arith.constant 0 : index
    %c0_2 = arith.constant 0 : index
    %1 = vector.load %arg4[%c0_1, %c0_2] : memref<32x32xf32, #tpu.memory_space<vmem>>, vector<32x32xf32>
    %cst = arith.constant dense<0.000000e+00> : vector<2x32xf32>
    %2 = tpu.matmul %0, %1, %cst {dimension_numbers = #tpu.dot_dimension_numbers<[1], [0], [0], [1], [0, 0, 1, 1], [], []>} : vector<2x32xf32>, vector<32x32xf32>, vector<2x32xf32> -> vector<2x32xf32>
    %c0_3 = arith.constant 0 : index
    %c0_4 = arith.constant 0 : index
    %3 = vector.load %arg5[%c0_3, %c0_4] : memref<1x32xf32, #tpu.memory_space<vmem>>, vector<1x32xf32>
    %4 = vector.broadcast %3 : vector<1x32xf32> to vector<2x32xf32>
    %5 = arith.addf %2, %4 : vector<2x32xf32>
    %c0_5 = arith.constant 0 : index
    %c0_6 = arith.constant 0 : index
    %c0_7 = arith.constant 0 : index
    %6 = vector.load %arg3[%c0_5, %c0_6, %c0_7] : memref<2x16x32xf32, #tpu.memory_space<vmem>>, vector<2x16x32xf32>
    %7 = vector.shape_cast %5 : vector<2x32xf32> to vector<2x1x32xf32>
    %8 = vector.broadcast %7 : vector<2x1x32xf32> to vector<2x16x32xf32>
    %9 = arith.addf %6, %8 : vector<2x16x32xf32>
    %10 = math.tanh %9 : vector<2x16x32xf32>
    %c0_8 = arith.constant 0 : index
    %c0_9 = arith.constant 0 : index
    %11 = vector.load %arg6[%c0_8, %c0_9] : memref<1x32xf32, #tpu.memory_space<vmem>>, vector<1x32xf32>
    %12 = vector.shape_cast %11 : vector<1x32xf32> to vector<1x1x32xf32>
    %13 = vector.broadcast %12 : vector<1x1x32xf32> to vector<2x16x32xf32>
    %14 = arith.mulf %10, %13 : vector<2x16x32xf32>
    %cst_10 = arith.constant dense<0.000000e+00> : vector<2x16xf32>
    %15 = vector.multi_reduction <add>, %14, %cst_10 [2] : vector<2x16x32xf32> to vector<2x16xf32>
    %c0_11 = arith.constant 0 : index
    %c0_12 = arith.constant 0 : index
    %16 = memref.load %arg7[%c0_11, %c0_12] : memref<1x1xf32, #tpu.memory_space<smem>>
    %17 = vector.broadcast %16 : f32 to vector<2x16xf32>
    %18 = arith.addf %15, %17 : vector<2x16xf32>
    %cst_13 = arith.constant dense<0xFF800000> : vector<2xf32>
    %19 = vector.multi_reduction <maximumf>, %18, %cst_13 [1] : vector<2x16xf32> to vector<2xf32>
    %20 = vector.shape_cast %19 : vector<2xf32> to vector<2x1xf32>
    %21 = vector.broadcast %20 : vector<2x1xf32> to vector<2x16xf32>
    %22 = arith.subf %18, %21 : vector<2x16xf32>
    %23 = math.exp %22 : vector<2x16xf32>
    %cst_14 = arith.constant dense<0.000000e+00> : vector<2xf32>
    %24 = vector.multi_reduction <add>, %23, %cst_14 [1] : vector<2x16xf32> to vector<2xf32>
    %25 = vector.shape_cast %24 : vector<2xf32> to vector<2x1xf32>
    %26 = vector.broadcast %25 : vector<2x1xf32> to vector<2x16xf32>
    %27 = arith.divf %23, %26 : vector<2x16xf32>
    %c0_15 = arith.constant 0 : index
    %c0_16 = arith.constant 0 : index
    %c0_17 = arith.constant 0 : index
    %28 = vector.load %arg2[%c0_15, %c0_16, %c0_17] : memref<2x16x32xf32, #tpu.memory_space<vmem>>, vector<2x16x32xf32>
    %29 = vector.shape_cast %27 : vector<2x16xf32> to vector<2x16x1xf32>
    %30 = vector.broadcast %29 : vector<2x16x1xf32> to vector<2x16x32xf32>
    %31 = arith.mulf %30, %28 : vector<2x16x32xf32>
    %cst_18 = arith.constant dense<0.000000e+00> : vector<2x32xf32>
    %32 = vector.multi_reduction <add>, %31, %cst_18 [1] : vector<2x16x32xf32> to vector<2x32xf32>
    %c0_19 = arith.constant 0 : index
    %c0_20 = arith.constant 0 : index
    %33 = vector.load %arg8[%c0_19, %c0_20] : memref<2x32xf32, #tpu.memory_space<vmem>>, vector<2x32xf32>
    tpu.vector_store %arg8[%c0_19, %c0_20], %32 {strides = array<i32>} : memref<2x32xf32, #tpu.memory_space<vmem>>, vector<2x32xf32>,
    return
  }
  func.func @transform_0(%arg0: i32) -> (i32, i32) {
    %c0_i32 = arith.constant 0 : i32
    %c0_i32_0 = arith.constant 0 : i32
    return %arg0, %c0_i32 : i32, i32
  }
  func.func @transform_1(%arg0: i32) -> (i32, i32, i32) {
    %c0_i32 = arith.constant 0 : i32
    %c0_i32_0 = arith.constant 0 : i32
    %c0_i32_1 = arith.constant 0 : i32
    return %arg0, %c0_i32, %c0_i32_0 : i32, i32, i32
  }
  func.func @transform_2(%arg0: i32) -> (i32, i32, i32) {
    %c0_i32 = arith.constant 0 : i32
    %c0_i32_0 = arith.constant 0 : i32
    %c0_i32_1 = arith.constant 0 : i32
    return %arg0, %c0_i32, %c0_i32_0 : i32, i32, i32
  }
  func.func @transform_3(%arg0: i32) -> (i32, i32) {
    %c0_i32 = arith.constant 0 : i32
    %c0_i32_0 = arith.constant 0 : i32
    %c0_i32_1 = arith.constant 0 : i32
    return %c0_i32, %c0_i32_0 : i32, i32
  }
  func.func @transform_4(%arg0: i32) -> (i32, i32) {
    %c0_i32 = arith.constant 0 : i32
    %c0_i32_0 = arith.constant 0 : i32
    %c0_i32_1 = arith.constant 0 : i32
    return %c0_i32, %c0_i32_0 : i32, i32
  }
  func.func @transform_5(%arg0: i32) -> (i32, i32) {
    %c0_i32 = arith.constant 0 : i32
    %c0_i32_0 = arith.constant 0 : i32
    %c0_i32_1 = arith.constant 0 : i32
    return %c0_i32, %c0_i32_0 : i32, i32
  }
  func.func @transform_6(%arg0: i32) -> (i32, i32) {
    %c0_i32 = arith.constant 0 : i32
    %c0_i32_0 = arith.constant 0 : i32
    %c0_i32_1 = arith.constant 0 : i32
    return %c0_i32, %c0_i32_0 : i32, i32
  }
  func.func @transform_7(%arg0: i32) -> (i32, i32) {
    %c0_i32 = arith.constant 0 : i32
    %c0_i32_0 = arith.constant 0 : i32
    return %arg0, %c0_i32 : i32, i32
  }
}

</mosaic_0001>

<bundles_post_ra>
// kernel: tpu_custom_call.1
= control target key start
LH: loop header
LB: loop body
LE: loop exit
PB: predicated region body
PF: predicated region fallthrough
CT: control target
= control target key end

     0   :  { %13 = vsyncpa [#allocation4], 0  ;;  %s548_s0 = inlined_call_operand.vmem [shape: f32[2,32], index: 0, kind: input, shape index: {}]   ;;  %s549_s1 = inlined_call_operand.hbm [shape: f32[2,16,32], index: 1, kind: input, shape index: {}]   ;;  %s550_s2 = inlined_call_operand.hbm [shape: f32[2,16,32], index: 2, kind: input, shape index: {}]   ;;  %s551_s3 = inlined_call_operand.hbm [shape: f32[32,32], index: 3, kind: input, shape index: {}]   ;;  %s552_s4 = inlined_call_operand.vmem [shape: f32[1,32], index: 4, kind: input, shape index: {}]   ;;  %s553_s5 = inlined_call_operand.vmem [shape: f32[1,32], index: 5, kind: input, shape index: {}]   ;;  %s554_s6 = inlined_call_operand.<no memory space> [shape: f32[1,1], index: 6, kind: input, shape index: {}]   ;;  %s555_s7 = inlined_call_operand.hbm [shape: f32[2,32], index: 7, kind: output, shape index: {}]  }
   0x1   :  { %14 = vsyncpa [#allocation7], 0 }
   0x2   :  { %15 = vsyncpa [#allocation5], 0  ;;  %s35_s26 = sshll.u32 %s550_s2, 4  ;;  %s459_s27 = smov [#allocation6]   ;;  %s36_s26 = int_to_ptr.hbm [resolvable:$true] %s35_s26 }
   0x3   :  { %s37_s28 = sshll.u32 %s459_s27, 4  ;;  %s22_s8 = sshll.u32 %s549_s1, 4  ;;  %s38_s28 = int_to_ptr.vmem [resolvable:$true] %s37_s28  ;;  %s23_s8 = int_to_ptr.hbm [resolvable:$true] %s22_s8 }
   0x4   :  { %s460_s9 = smov 128   ;;  %s461_s10 = smov 8  }
   0x5   :  { %43 = dma.hbm_to_vmem [thread:$0]  %s36_s26, 512, %s38_s28, [#allocation7], %s460_s9, %s460_s9, %s461_s10  }
   0x6   :  { %s462_s11 = smov [#allocation3]   ;;  %s48_s15 = sshll.u32 %s551_s3, 4  ;;  %s49_s15 = int_to_ptr.hbm [resolvable:$true] %s48_s15 }
   0x7   :  { %s24_s12 = sshll.u32 %s462_s11, 4  ;;  %s463_s2 = smov [#allocation8]   ;;  %s25_s12 = int_to_ptr.vmem [resolvable:$true] %s24_s12 }
   0x8   :  { %30 = dma.hbm_to_vmem [thread:$0]  %s23_s8, 512, %s25_s12, [#allocation4], %s460_s9, %s460_s9, %s461_s10  }
   0x9   :  { %s50_s16 = sshll.u32 %s463_s2, 4  ;;  %s51_s16 = int_to_ptr.vmem [resolvable:$true] %s50_s16 }
   0xa   :  { %56 = dma.hbm_to_vmem [thread:$0]  %s49_s15, 512, %s51_s16, [#allocation7], %s460_s9, %s460_s9, %s461_s10  }
   0xb   :  { %453 = dma.done.wait [#allocation4], 512  }
   0xc   :  { %454 = vsyncadd [#allocation4], 4294966784 }
   0xd   :  { %455 = dma.done.wait [#allocation7], 1024  }
   0xe   :  { %456 = vsyncadd [#allocation7], 4294966272  ;;  %v79_v0 = vld [vmem:[#allocation8 + $0x18] sm:$0xff]  ;;  %v78_v1 = vld [vmem:[#allocation8 + $0x10] sm:$0xff]  ;;  %vm84_vm0 = vcmask 261120   ;;  %v156_v33 = vlaneseq  ;;  %v147_v36 = vstv %s554_s6  ;;  %vm161_vm1 = vcmask 130112  }
   0xf   :  { %100 = vmatpush.msra.mxu0 %v79_v0  ;;  %v77_v2 = vld [vmem:[#allocation8 + $0x8] sm:$0xff]  ;;  %v76_v3 = vld [vmem:[#allocation8] sm:$0xff]  ;;  %v110_v12 = vld [vmem:[#allocation6 + $0x10] sm:$0xff]  ;;  %vm166_vm2 = vcmask 1041409   ;;  %vm169_vm3 = vcmask 123904   ;;  %v464_v52 = vmov 0  }
  0x10   :  { %v75_v4 = vld [vmem:[%s548_s0] sm:$0x3]  ;;  %v109_v11 = vld [vmem:[#allocation6 + $0x8] sm:$0xff]  ;;  %v111_v15 = vld [vmem:[#allocation6 + $0x18] sm:$0xff]  ;;  %v157_v35 = vand.u32 127, %v156_v33  ;;  %334 = vset.pattern.permute.xlu1 %v464_v52  ;;  %333 = vset.pattern.permute.xlu0 %v464_v52  ;;  %s465_s6 = smov [#allocation9]  }
  0x11   :  { %101 = vmatpush.msra.mxu0 %v78_v1  ;;  %v335_v5 = vld [vmem:[%s552_s4] ss:$0 sm:$0xff]  ;;  %332 = vset.pattern.permute.xlu2 %v464_v52  ;;  %s311_s20 = sshll.u32 %s465_s6, 4  ;;  %s313_s23 = sshll.u32 %s555_s7, 4  ;;  %vm304_vm12 = vcmask 254976   ;;  %s312_s20 = int_to_ptr.vmem [resolvable:$true] %s311_s20  ;;  %s314_s23 = int_to_ptr.hbm [resolvable:$true] %s313_s23 }
  0x12   :  { %v108_v8 = vld [vmem:[#allocation6] sm:$0xff]  ;;  %v159_v37 = vadd.s32 4294967288, %v157_v35 }
  0x13   :  { %102 = vmatpush.msra.mxu0 %v77_v2  ;;  %v336_v19 = vld [vmem:[%s553_s5] ss:$0 sm:$0xff] }
  0x15   :  { %103 = vmatpush.msra.mxu0 %v76_v3 }
  0x16   :  { %324 = vmatmul.msk.f32.vlgmr.msra.gmra.mxu0 %vm84_vm0, %v75_v4 }
  0x93   :  { %v105_v6 = vpop.f32.mrf.mxu0 }
  0x94   :  { %v106_v7 = vadd.f32 %v335_v5, %v105_v6 }
  0x96   :  { %v113_v9 = vrot.slane %v106_v7, 1  ;;  %v114_v10 = vperm.slane %v106_v7, 0 }
  0x98   :  { %v115_v13 = vperm.slane %v113_v9, 0  ;;  %v118_v14 = vadd.f32 %v114_v10, %v108_v8  ;;  %v119_v16 = vadd.f32 %v114_v10, %v109_v11 }
  0x9a   :  { %v120_v17 = vadd.f32 %v115_v13, %v110_v12  ;;  %337 = vtanh.f32 %v118_v14  ;;  %v121_v18 = vadd.f32 %v115_v13, %v111_v15 }
  0x9c   :  { %339 = vtanh.f32 %v120_v17 }
  0x9d   :  { %341 = vtanh.f32 %v119_v16 }
  0x9e   :  { %343 = vtanh.f32 %v121_v18 }
  0xa0   :  { %v338_v20 = vpop.eup %337 }
  0xa1   :  { %v130_v21 = vmul.f32 %v338_v20, %v336_v19 }
  0xa2   :  { %v340_v22 = vpop.eup %339 }
  0xa3   :  { %v134_v23 = vsel %vm84_vm0, %v130_v21, 0.0  ;;  %v132_v24 = vmul.f32 %v340_v22, %v336_v19  ;;  %v342_v25 = vpop.eup %341 }
  0xa4   :  { %135 = vadd.xlane.f32.xlu0 %v134_v23  ;;  %v344_v27 = vpop.eup %343  ;;  %v131_v28 = vmul.f32 %v342_v25, %v336_v19 }
  0xa5   :  { %v140_v26 = vsel %vm84_vm0, %v132_v24, 0.0  ;;  %v133_v29 = vmul.f32 %v344_v27, %v336_v19 }
  0xa6   :  { %141 = vadd.xlane.f32.xlu1 %v140_v26  ;;  %v137_v30 = vsel %vm84_vm0, %v131_v28, 0.0 }
  0xa7   :  { %v143_v31 = vsel %vm84_vm0, %v133_v29, 0.0 }
  0xac   :  { %138 = vadd.xlane.f32.xlu0 %v137_v30 }
  0xae   :  { %144 = vadd.xlane.f32.xlu1 %v143_v31 }
 0x117   :  { %v136_v32 = vpop.xlane.xlu0 %135 }
 0x118   :  { %v148_v39 = vadd.f32 %v147_v36, %v136_v32 }
 0x119   :  { %v142_v34 = vpop.xlane.xlu1 %141 }
 0x11a   :  { %v150_v40 = vadd.f32 %v147_v36, %v142_v34  ;;  %v158_v45 = vperm.slane %v148_v39, %v157_v35 }
 0x11c   :  { %v163_v46 = vperm.slane %v150_v40, %v157_v35 }
 0x11f   :  { %v139_v38 = vpop.xlane.xlu0 %138 }
 0x120   :  { %v149_v41 = vadd.f32 %v147_v36, %v139_v38 }
 0x121   :  { %v145_v42 = vpop.xlane.xlu1 %144 }
 0x122   :  { %v160_v43 = vperm.slane %v149_v41, %v159_v37  ;;  %v151_v44 = vadd.f32 %v147_v36, %v145_v42 }
 0x124   :  { %v164_v47 = vperm.slane %v151_v44, %v159_v37  ;;  %v162_v48 = vsel %vm161_vm1, %v160_v43, %v158_v45  ;;  %v255_v45 = vld [vmem:[#allocation3 + $0x8] sm:$0xff] }
 0x126   :  { %v165_v49 = vsel %vm161_vm1, %v164_v47, %v163_v46 }
 0x127   :  { %v167_v50 = vsel %vm166_vm2, %v165_v49, %v162_v48 }
 0x128   :  { %v170_v51 = vsel %vm169_vm3, %v167_v50, -inf }
 0x129   :  { %171 = vmax.xlane.f32.xlu2 %v170_v51  ;;  %v256_v51 = vld [vmem:[#allocation3 + $0x10] sm:$0xff] }
 0x19c   :  { %v172_v53 = vpop.xlane.xlu2 %171 }
 0x19d   :  { %v174_v54 = vperm.slane %v172_v53, 0  ;;  %v175_v55 = vperm.slane %v172_v53, 1 }
 0x19f   :  { %v178_v56 = vsub.f32 %v148_v39, %v174_v54  ;;  %v179_v57 = vsub.f32 %v149_v41, %v174_v54  ;;  %v180_v58 = vsub.f32 %v150_v40, %v175_v55  ;;  %v181_v62 = vsub.f32 %v151_v44, %v175_v55  ;;  %v254_v44 = vld [vmem:[#allocation3] sm:$0xff]  ;;  %v257_v55 = vld [vmem:[#allocation3 + $0x18] sm:$0xff] }
 0x1a1   :  { %v182_v59 = vmul.f32 1.442695, %v178_v56  ;;  %v184_v60 = vmul.f32 1.442695, %v179_v57  ;;  %v186_v61 = vmul.f32 1.442695, %v180_v58 }
 0x1a2   :  { %v188_v63 = vmul.f32 1.442695, %v181_v62 }
 0x1a3   :  { %345 = vpow2.f32 %v182_v59 }
 0x1a4   :  { %347 = vpow2.f32 %v184_v60 }
 0x1a5   :  { %349 = vpow2.f32 %v186_v61 }
 0x1a6   :  { %351 = vpow2.f32 %v188_v63 }
 0x1a9   :  { %v346_v0 = vpop.eup %345 }
 0x1aa   :  { %v348_v1 = vpop.eup %347  ;;  %195 = vperm.xlu2 %332, %v346_v0  }
 0x1ab   :  { %v350_v2 = vpop.eup %349  ;;  %198 = vperm.xlu0 %333, %v348_v1  }
 0x1ac   :  { %201 = vperm.xlu1 %334, %v350_v2   ;;  %v352_v3 = vpop.eup %351 }
 0x1b2   :  { %204 = vperm.xlu2 %332, %v352_v3  }
 0x204   :  { %v196_v4 = vpop.permute.xlu2 %195 }
 0x205   :  { %v206_v7 = vperm.slane %v196_v4, %v157_v35 }
 0x20c   :  { %v205_v5 = vpop.permute.xlu2 %204 }
 0x20d   :  { %v210_v10 = vperm.slane %v205_v5, %v159_v37 }
 0x21d   :  { %v199_v6 = vpop.permute.xlu0 %198 }
 0x21e   :  { %v202_v8 = vpop.permute.xlu1 %201  ;;  %v207_v9 = vperm.slane %v199_v6, %v159_v37 }
 0x21f   :  { %v209_v11 = vperm.slane %v202_v8, %v157_v35 }
 0x220   :  { %v208_v12 = vsel %vm161_vm1, %v207_v9, %v206_v7 }
 0x221   :  { %v211_v13 = vsel %vm161_vm1, %v210_v10, %v209_v11 }
 0x222   :  { %v212_v14 = vsel %vm166_vm2, %v211_v13, %v208_v12 }
 0x223   :  { %v214_v15 = vsel %vm169_vm3, %v212_v14, 0.0 }
 0x224   :  { %215 = vadd.xlane.f32.xlu2 %v214_v15 }
 0x297   :  { %v216_v16 = vpop.xlane.xlu2 %215 }
 0x298   :  { %v218_v17 = vperm.slane %v216_v16, 0  ;;  %v219_v18 = vperm.slane %v216_v16, 1 }
 0x29a   :  { %353 = vrcp.f32 %v218_v17  ;;  %v233_v25 = vand.u32 2147483648, %v218_v17  ;;  %v249_v26 = vand.u32 2147483648, %v219_v18  ;;  %v231_v28 = vand.u32 2147483647, %v218_v17 }
 0x29b   :  { %355 = vrcp.f32 %v219_v18  ;;  %v247_v30 = vand.u32 2147483647, %v219_v18  ;;  %vm227_vm6 = vweird.f32 %v218_v17  ;;  %vm243_vm7 = vweird.f32 %v219_v18 }
 0x29c   :  { %v234_v33 = vor.u32 1.1754944e-38, %v233_v25  ;;  %v250_v34 = vor.u32 1.1754944e-38, %v249_v26  ;;  %vm232_vm10 = vcmp.eq.f32.partialorder %v231_v28, 8.507059e+37 }
 0x29d   :  { %vm248_vm11 = vcmp.eq.f32.partialorder %v247_v30, 8.507059e+37 }
 0x2a0   :  { %v354_v19 = vpop.eup %353 }
 0x2a1   :  { %v356_v20 = vpop.eup %355  ;;  %v223_v21 = vmul.f32 %v354_v19, %v218_v17  ;;  %vm228_vm4 = vweird.f32 %v354_v19 }
 0x2a2   :  { %v239_v22 = vmul.f32 %v356_v20, %v219_v18  ;;  %vm244_vm5 = vweird.f32 %v356_v20  ;;  %vm229_vm8 = vmor %vm227_vm6, %vm228_vm4 }
 0x2a3   :  { %v224_v23 = vsub.f32 1.0, %v223_v21  ;;  %vm245_vm9 = vmor %vm243_vm7, %vm244_vm5 }
 0x2a4   :  { %v240_v24 = vsub.f32 1.0, %v239_v22 }
 0x2a5   :  { %v225_v27 = vmul.f32 %v354_v19, %v224_v23 }
 0x2a6   :  { %v241_v29 = vmul.f32 %v356_v20, %v240_v24 }
 0x2a7   :  { %v226_v31 = vadd.f32 %v354_v19, %v225_v27 }
 0x2a8   :  { %v242_v32 = vadd.f32 %v356_v20, %v241_v29 }
 0x2a9   :  { %v230_v35 = vsel %vm229_vm8, %v354_v19, %v226_v31 }
 0x2aa   :  { %v246_v36 = vsel %vm245_vm9, %v356_v20, %v242_v32  ;;  %v235_v37 = vsel %vm232_vm10, %v234_v33, %v230_v35 }
 0x2ab   :  { %v251_v38 = vsel %vm248_vm11, %v250_v34, %v246_v36  ;;  %v236_v39 = vmul.f32 %v346_v0, %v235_v37  ;;  %v237_v41 = vmul.f32 %v348_v1, %v235_v37 }
 0x2ac   :  { %v252_v40 = vmul.f32 %v350_v2, %v251_v38  ;;  %v253_v42 = vmul.f32 %v352_v3, %v251_v38 }
 0x2ad   :  { %260 = vperm.xlu1 %334, %v236_v39  }
 0x2ae   :  { %270 = vperm.xlu0 %333, %v252_v40  }
 0x2b5   :  { %265 = vperm.xlu1 %334, %v237_v41  }
 0x2bd   :  { %275 = vperm.xlu1 %334, %v253_v42  }
 0x31f   :  { %v261_v43 = vpop.permute.xlu1 %260 }
 0x320   :  { %v278_v46 = vmul.f32 %v261_v43, %v254_v44  ;;  %v271_v52 = vpop.permute.xlu0 %270 }
 0x321   :  { %v280_v56 = vmul.f32 %v271_v52, %v256_v51 }
 0x322   :  { %v282_v49 = vsel %vm84_vm0, %v278_v46, 0.0 }
 0x323   :  { %v291_v60 = vsel %vm84_vm0, %v280_v56, 0.0 }
 0x327   :  { %v266_v47 = vpop.permute.xlu1 %265 }
 0x328   :  { %v279_v48 = vmul.f32 %v266_v47, %v255_v45 }
 0x32a   :  { %v283_v50 = vsel %vm84_vm0, %v279_v48, 0.0 }
 0x32b   :  { %v284_v53 = vadd.f32 %v283_v50, %v282_v49 }
 0x32d   :  { %v285_v54 = vrot.slane %v284_v53, 4 }
 0x32f   :  { %v286_v57 = vadd.f32 %v285_v54, %v284_v53  ;;  %v276_v58 = vpop.permute.xlu1 %275 }
 0x330   :  { %v281_v59 = vmul.f32 %v276_v58, %v257_v55 }
 0x331   :  { %v287_v62 = vrot.slane %v286_v57, 2 }
 0x332   :  { %v292_v61 = vsel %vm84_vm0, %v281_v59, 0.0 }
 0x333   :  { %v293_v63 = vadd.f32 %v292_v61, %v291_v60  ;;  %v288_v1 = vadd.f32 %v287_v62, %v286_v57 }
 0x335   :  { %v294_v0 = vrot.slane %v293_v63, 4  ;;  %v289_v4 = vrot.slane %v288_v1, 1 }
 0x337   :  { %v295_v2 = vadd.f32 %v294_v0, %v293_v63  ;;  %v290_v7 = vadd.f32 %v289_v4, %v288_v1 }
 0x339   :  { %v296_v3 = vrot.slane %v295_v2, 2 }
 0x33b   :  { %v297_v5 = vadd.f32 %v296_v3, %v295_v2 }
 0x33d   :  { %v298_v6 = vrot.slane %v297_v5, 1 }
 0x33f   :  { %v299_v8 = vadd.f32 %v298_v6, %v297_v5 }
 0x341   :  { %v302_v9 = vsel %vm166_vm2, %v299_v8, %v290_v7 }
 0x342   :  { %305 = vst.msk [vmem:[#allocation9] sm:$0x3] %vm304_vm12, %v302_v9 }
 0x343   :  { %316 = dma.vmem_to_hbm [thread:$0]  %s312_s20, 32, %s314_s23, [#allocation5]  }
 0x344   :  { %457 = dma.done.wait [#allocation5], 32  }
 0x345   :  { %458 = vsyncadd [#allocation5], 4294967264 }
 0x346   :  { %321 = vsyncpa [#allocation4], 1 }
 0x347   :  { %322 = vsyncpa [#allocation7], 1 }
 0x348   :  { %323 = vsyncpa [#allocation5], 1 }

</bundles_post_ra>
